<compile_context>
chip_gen: v6e
topology: v6e:2x2x1
jax: 0.10.0
libtpu: 0.0.40
codegen_flags: <defaults>
</compile_context>

<pallas_src>
import math

import jax
import jax.numpy as jnp
from jax.experimental import pallas as pl
from jax.experimental.pallas import tpu as pltpu


def _choose_batch_tile(B, C):
    # Lane-dense tiles: Bt*C should be a multiple of the 128-lane vreg width.
    bt = 128 // math.gcd(C, 128)
    # Amortize the ~0.35us per-grid-step overhead for large batches (grow toward ~2048 lanes).
    while bt * 2 * C <= 2048 and bt * 2 <= B:
        bt *= 2
    return bt


def contraction_forward(x, y, U_list, W_list, batch_tile=None):
    """x: (B, C, D) float32, y: (B, E) float32 (element encoding, e.g. one-hot).
    U_list[nu-1]: (D,)*nu + (k_nu,)   -- U_matrix buffers
    W_list[nu-1]: (E, k_nu, C)        -- element-dependent weights
    Returns (B, C) float32 (flattened output, scalar irrep_out)."""
    B, C, D = x.shape
    E = y.shape[1]
    correlation = len(U_list)

    Bt = batch_tile or _choose_batch_tile(B, C)
    L = Bt * C
    T = pl.cdiv(B, Bt)
    B_pad = T * Bt

    # ---- one-time wrapper-side precompute (all tiny, plain JAX) ----
    # Fold U into the element-dependent weights and tile channels Bt times along lanes so
    # lane j = b_local*C + c.  Order: nu = correlation .. 1 (consumption order).
    uw_tiled, dims = [], []
    for nu in range(correlation, 0, -1):
        U = U_list[nu - 1].astype(jnp.float32)                       # (D,)*nu + (k,)
        W = W_list[nu - 1].astype(jnp.float32)                       # (E, k, C)
        UW = jnp.einsum('...k,ekc->e...c', U, W).reshape(E, D ** nu, C)
        uw_tiled.append(jnp.tile(UW, (1, 1, Bt)))                    # (E, D**nu, L)
        dims.append(D ** nu)

    # x: (B, C, D) -> (B*C, D): free row-major reshape (no extra HBM transpose pass).
    x2 = x.reshape(B * C, D).astype(jnp.float32)
    # y: (B, E) -> lane-expanded masks (E, B*C) so per-element weights are lane-aligned.
    y_lane = jnp.repeat(jnp.transpose(y.astype(jnp.float32)), C, axis=1)   # (E, B*C)

    if B_pad != B:
        x2 = jnp.pad(x2, ((0, (B_pad - B) * C), (0, 0)))
        y_lane = jnp.pad(y_lane, ((0, 0), (0, (B_pad - B) * C)))

    def kernel(x_ref, y_ref, *rest):
        uw_refs = rest[:correlation]          # nu = correlation .. 1
        o_ref = rest[correlation]

        x_l = x_ref[...].T                                    # (D, L): channels+batch on lanes
        masks = [y_ref[pl.ds(e, 1), :] for e in range(E)]     # E x (1, L)

        def select(uw_ref):
            # 'ekc,be->kc' per lane-packed batch tile: pure VPU multiply-adds (no MXU).
            acc = masks[0] * uw_ref[0]
            for e in range(1, E):
                acc = acc + masks[e] * uw_ref[e]
            return acc                                        # (D**nu, L)

        # --- main term, nu = correlation ---
        out = select(uw_refs[0])                              # (D**corr, L)
        dm = D ** (correlation - 1)
        out = jnp.sum(out.reshape(dm, D, L) * x_l[None, :, :], axis=1)   # (dm, L)

        # --- descending correlations ---
        for idx in range(1, correlation):
            nu = correlation - idx
            out = select(uw_refs[idx]) + out                  # (D**nu, L)
            dm = D ** (nu - 1)
            out = jnp.sum(out.reshape(dm, D, L) * x_l[None, :, :], axis=1)

        o_ref[...] = out                                      # (1, L) lane-dense full-width store

    in_specs = [
        pl.BlockSpec((L, D), lambda t: (t, 0)),               # x tile (Bt batch elements)
        pl.BlockSpec((E, L), lambda t: (0, t)),               # y lane-masks for this tile
    ]
    # Constant block index -> DMA'd once, VMEM-resident across grid steps (~100 KB total).
    in_specs += [pl.BlockSpec((E, dn, L), lambda t: (0, 0, 0)) for dn in dims]

    sum_dn = sum(dims)
    cost = pl.CostEstimate(
        flops=int(T * L * (2 * E + 3) * sum_dn),
        transcendentals=0,
        bytes_accessed=int(4 * (x2.size + y_lane.size + sum(u.size for u in uw_tiled) + T * L)),
    )

    out = pl.pallas_call(
        kernel,
        out_shape=jax.ShapeDtypeStruct((T, L), jnp.float32),
        grid_spec=pltpu.PrefetchScalarGridSpec(
            num_scalar_prefetch=0,
            grid=(T,),
            in_specs=in_specs,
            out_specs=pl.BlockSpec((1, L), lambda t: (t, 0)),
        ),
        compiler_params=pltpu.CompilerParams(
            dimension_semantics=("parallel",)),
        cost_estimate=cost,
    )(x2, y_lane, *uw_tiled)

    # out.view(B, prod(shape[1:])) in the torch module; (T, Bt*C) -> (B_pad, C) is free.
    return out.reshape(B_pad, C)[:B]


def reference_forward(x, y, U_list, W_list):
    """Plain-JAX transcription of Contraction.forward (element_dependent branch)."""
    correlation = len(U_list)
    out = jnp.einsum('...ik,ekc,bci,be->bc...', U_list[-1], W_list[-1], x, y)
    for corr in range(correlation - 1, 0, -1):
        c_t = jnp.einsum('...k,ekc,be->bc...', U_list[corr - 1], W_list[corr - 1], y)
        c_t = c_t + out
        out = jnp.einsum('bc...i,bci->bc...', c_t, x)
    return out.reshape(out.shape[0], -1)


if __name__ == "__main__":
    # Small, module-consistent shapes:
    #   irreps_in  = "32x0e + 32x1o"  -> num_features C = 32, coupling_irreps = "0e+1o", D = 4
    #   irrep_out  = "0e" (scalar), correlation = 3, num_elements E = 3, batch B = 4
    B, C, D, E = 4, 32, 4, 3
    correlation = 3
    # Number of coupling paths per correlation order (sizes of the last U dim).
    k_per_nu = {1: 1, 2: 2, 3: 4}

    key = jax.random.PRNGKey(0)
    keys = jax.random.split(key, 2 + 2 * correlation)

    x = jax.random.normal(keys[0], (B, C, D), dtype=jnp.float32)
    elem_idx = jax.random.randint(keys[1], (B,), 0, E)
    y = jax.nn.one_hot(elem_idx, E, dtype=jnp.float32)

    U_list, W_list = [], []
    for nu in range(1, correlation + 1):
        k = k_per_nu[nu]
        # TODO(synk): real U_matrix_{nu} buffers come from e3nn Wigner-3j recoupling
        # (U_matrix_real); here they are synthetic deterministic buffers of the same shape.
        U = jax.random.normal(keys[1 + nu], (D,) * nu + (k,), dtype=jnp.float32)
        # torch init: randn(num_elements, num_params, num_features) / num_params
        W = jax.random.normal(keys[1 + correlation + nu], (E, k, C), dtype=jnp.float32) / k
        U_list.append(U)
        W_list.append(W)

    out = contraction_forward(x, y, U_list, W_list)
    jax.block_until_ready(out)

    ref = reference_forward(x, y, U_list, W_list)
    assert out.shape == (B, C), out.shape
    assert jnp.allclose(out, ref, atol=1e-4, rtol=1e-4), float(jnp.max(jnp.abs(out - ref)))
    print("KERNEL_OK")
</pallas_src>

<mosaic_0001>
module attributes {stable_mosaic.version = 11 : i64} {
  func.func @kernel(%arg0: i32, %arg1: memref<128x4xf32, #tpu.memory_space<vmem>>, %arg2: memref<3x128xf32, #tpu.memory_space<vmem>>, %arg3: memref<3x64x128xf32, #tpu.memory_space<vmem>>, %arg4: memref<3x16x128xf32, #tpu.memory_space<vmem>>, %arg5: memref<3x4x128xf32, #tpu.memory_space<vmem>>, %arg6: memref<1x128xf32, #tpu.memory_space<vmem>>) attributes {dimension_semantics = [#tpu.dimension_semantics<parallel>], iteration_bounds = array<i64: 1>, scalar_prefetch = 0 : i64, scratch_operands = 0 : i64, tpu.core_type = #tpu.core_type<tc>, window_params = [{transform_indices = @transform_0, window_bounds = array<i64: 128, 4>}, {transform_indices = @transform_1, window_bounds = array<i64: 3, 128>}, {pipeline_mode = #tpu.pipeline_mode<synchronous>, transform_indices = @transform_2, window_bounds = array<i64: 3, 64, 128>}, {pipeline_mode = #tpu.pipeline_mode<synchronous>, transform_indices = @transform_3, window_bounds = array<i64: 3, 16, 128>}, {pipeline_mode = #tpu.pipeline_mode<synchronous>, transform_indices = @transform_4, window_bounds = array<i64: 3, 4, 128>}, {transform_indices = @transform_5, window_bounds = array<i64: 1, 128>}]} {
    %c0 = arith.constant 0 : index
    %c0_0 = arith.constant 0 : index
    %0 = vector.load %arg1[%c0, %c0_0] : memref<128x4xf32, #tpu.memory_space<vmem>>, vector<128x4xf32>
    %1 = tpu.transpose %0, [1, 0] : vector<128x4xf32> -> vector<4x128xf32>
    %c0_1 = arith.constant 0 : index
    %c0_2 = arith.constant 0 : index
    %2 = vector.load %arg2[%c0_1, %c0_2] : memref<3x128xf32, #tpu.memory_space<vmem>>, vector<1x128xf32>
    %c1 = arith.constant 1 : index
    %c0_3 = arith.constant 0 : index
    %3 = vector.load %arg2[%c1, %c0_3] : memref<3x128xf32, #tpu.memory_space<vmem>>, vector<1x128xf32>
    %c2 = arith.constant 2 : index
    %c0_4 = arith.constant 0 : index
    %4 = vector.load %arg2[%c2, %c0_4] : memref<3x128xf32, #tpu.memory_space<vmem>>, vector<1x128xf32>
    %c0_5 = arith.constant 0 : index
    %c0_6 = arith.constant 0 : index
    %c0_7 = arith.constant 0 : index
    %5 = vector.load %arg3[%c0_5, %c0_6, %c0_7] : memref<3x64x128xf32, #tpu.memory_space<vmem>>, vector<1x64x128xf32>
    %6 = vector.shape_cast %5 : vector<1x64x128xf32> to vector<64x128xf32>
    %7 = vector.broadcast %2 : vector<1x128xf32> to vector<64x128xf32>
    %8 = arith.mulf %7, %6 : vector<64x128xf32>
    %c1_8 = arith.constant 1 : index
    %c0_9 = arith.constant 0 : index
    %c0_10 = arith.constant 0 : index
    %9 = vector.load %arg3[%c1_8, %c0_9, %c0_10] : memref<3x64x128xf32, #tpu.memory_space<vmem>>, vector<1x64x128xf32>
    %10 = vector.shape_cast %9 : vector<1x64x128xf32> to vector<64x128xf32>
    %11 = vector.broadcast %3 : vector<1x128xf32> to vector<64x128xf32>
    %12 = arith.mulf %11, %10 : vector<64x128xf32>
    %13 = arith.addf %8, %12 : vector<64x128xf32>
    %c2_11 = arith.constant 2 : index
    %c0_12 = arith.constant 0 : index
    %c0_13 = arith.constant 0 : index
    %14 = vector.load %arg3[%c2_11, %c0_12, %c0_13] : memref<3x64x128xf32, #tpu.memory_space<vmem>>, vector<1x64x128xf32>
    %15 = vector.shape_cast %14 : vector<1x64x128xf32> to vector<64x128xf32>
    %16 = vector.broadcast %4 : vector<1x128xf32> to vector<64x128xf32>
    %17 = arith.mulf %16, %15 : vector<64x128xf32>
    %18 = arith.addf %13, %17 : vector<64x128xf32>
    %19 = vector.shape_cast %18 : vector<64x128xf32> to vector<16x4x128xf32>
    %20 = vector.shape_cast %1 : vector<4x128xf32> to vector<1x4x128xf32>
    %21 = vector.broadcast %20 : vector<1x4x128xf32> to vector<16x4x128xf32>
    %22 = arith.mulf %19, %21 : vector<16x4x128xf32>
    %cst = arith.constant dense<0.000000e+00> : vector<16x128xf32>
    %23 = vector.multi_reduction <add>, %22, %cst [1] : vector<16x4x128xf32> to vector<16x128xf32>
    %c0_14 = arith.constant 0 : index
    %c0_15 = arith.constant 0 : index
    %c0_16 = arith.constant 0 : index
    %24 = vector.load %arg4[%c0_14, %c0_15, %c0_16] : memref<3x16x128xf32, #tpu.memory_space<vmem>>, vector<1x16x128xf32>
    %25 = vector.shape_cast %24 : vector<1x16x128xf32> to vector<16x128xf32>
    %26 = vector.broadcast %2 : vector<1x128xf32> to vector<16x128xf32>
    %27 = arith.mulf %26, %25 : vector<16x128xf32>
    %c1_17 = arith.constant 1 : index
    %c0_18 = arith.constant 0 : index
    %c0_19 = arith.constant 0 : index
    %28 = vector.load %arg4[%c1_17, %c0_18, %c0_19] : memref<3x16x128xf32, #tpu.memory_space<vmem>>, vector<1x16x128xf32>
    %29 = vector.shape_cast %28 : vector<1x16x128xf32> to vector<16x128xf32>
    %30 = vector.broadcast %3 : vector<1x128xf32> to vector<16x128xf32>
    %31 = arith.mulf %30, %29 : vector<16x128xf32>
    %32 = arith.addf %27, %31 : vector<16x128xf32>
    %c2_20 = arith.constant 2 : index
    %c0_21 = arith.constant 0 : index
    %c0_22 = arith.constant 0 : index
    %33 = vector.load %arg4[%c2_20, %c0_21, %c0_22] : memref<3x16x128xf32, #tpu.memory_space<vmem>>, vector<1x16x128xf32>
    %34 = vector.shape_cast %33 : vector<1x16x128xf32> to vector<16x128xf32>
    %35 = vector.broadcast %4 : vector<1x128xf32> to vector<16x128xf32>
    %36 = arith.mulf %35, %34 : vector<16x128xf32>
    %37 = arith.addf %32, %36 : vector<16x128xf32>
    %38 = arith.addf %37, %23 : vector<16x128xf32>
    %39 = vector.shape_cast %38 : vector<16x128xf32> to vector<4x4x128xf32>
    %40 = vector.shape_cast %1 : vector<4x128xf32> to vector<1x4x128xf32>
    %41 = vector.broadcast %40 : vector<1x4x128xf32> to vector<4x4x128xf32>
    %42 = arith.mulf %39, %41 : vector<4x4x128xf32>
    %cst_23 = arith.constant dense<0.000000e+00> : vector<4x128xf32>
    %43 = vector.multi_reduction <add>, %42, %cst_23 [1] : vector<4x4x128xf32> to vector<4x128xf32>
    %c0_24 = arith.constant 0 : index
    %c0_25 = arith.constant 0 : index
    %c0_26 = arith.constant 0 : index
    %44 = vector.load %arg5[%c0_24, %c0_25, %c0_26] : memref<3x4x128xf32, #tpu.memory_space<vmem>>, vector<1x4x128xf32>
    %45 = vector.shape_cast %44 : vector<1x4x128xf32> to vector<4x128xf32>
    %46 = vector.broadcast %2 : vector<1x128xf32> to vector<4x128xf32>
    %47 = arith.mulf %46, %45 : vector<4x128xf32>
    %c1_27 = arith.constant 1 : index
    %c0_28 = arith.constant 0 : index
    %c0_29 = arith.constant 0 : index
    %48 = vector.load %arg5[%c1_27, %c0_28, %c0_29] : memref<3x4x128xf32, #tpu.memory_space<vmem>>, vector<1x4x128xf32>
    %49 = vector.shape_cast %48 : vector<1x4x128xf32> to vector<4x128xf32>
    %50 = vector.broadcast %3 : vector<1x128xf32> to vector<4x128xf32>
    %51 = arith.mulf %50, %49 : vector<4x128xf32>
    %52 = arith.addf %47, %51 : vector<4x128xf32>
    %c2_30 = arith.constant 2 : index
    %c0_31 = arith.constant 0 : index
    %c0_32 = arith.constant 0 : index
    %53 = vector.load %arg5[%c2_30, %c0_31, %c0_32] : memref<3x4x128xf32, #tpu.memory_space<vmem>>, vector<1x4x128xf32>
    %54 = vector.shape_cast %53 : vector<1x4x128xf32> to vector<4x128xf32>
    %55 = vector.broadcast %4 : vector<1x128xf32> to vector<4x128xf32>
    %56 = arith.mulf %55, %54 : vector<4x128xf32>
    %57 = arith.addf %52, %56 : vector<4x128xf32>
    %58 = arith.addf %57, %43 : vector<4x128xf32>
    %59 = vector.shape_cast %58 : vector<4x128xf32> to vector<1x4x128xf32>
    %60 = vector.shape_cast %1 : vector<4x128xf32> to vector<1x4x128xf32>
    %61 = arith.mulf %59, %60 : vector<1x4x128xf32>
    %cst_33 = arith.constant dense<0.000000e+00> : vector<1x128xf32>
    %62 = vector.multi_reduction <add>, %61, %cst_33 [1] : vector<1x4x128xf32> to vector<1x128xf32>
    %c0_34 = arith.constant 0 : index
    %c0_35 = arith.constant 0 : index
    %63 = vector.load %arg6[%c0_34, %c0_35] : memref<1x128xf32, #tpu.memory_space<vmem>>, vector<1x128xf32>
    tpu.vector_store %arg6[%c0_34, %c0_35], %62 {strides = array<i32>} : memref<1x128xf32, #tpu.memory_space<vmem>>, vector<1x128xf32>,
    return
  }
  func.func @transform_0(%arg0: i32) -> (i32, i32) {
    %c0_i32 = arith.constant 0 : i32
    %c0_i32_0 = arith.constant 0 : i32
    return %arg0, %c0_i32 : i32, i32
  }
  func.func @transform_1(%arg0: i32) -> (i32, i32) {
    %c0_i32 = arith.constant 0 : i32
    %c0_i32_0 = arith.constant 0 : i32
    return %c0_i32, %arg0 : i32, i32
  }
  func.func @transform_2(%arg0: i32) -> (i32, i32, i32) {
    %c0_i32 = arith.constant 0 : i32
    %c0_i32_0 = arith.constant 0 : i32
    %c0_i32_1 = arith.constant 0 : i32
    %c0_i32_2 = arith.constant 0 : i32
    return %c0_i32, %c0_i32_0, %c0_i32_1 : i32, i32, i32
  }
  func.func @transform_3(%arg0: i32) -> (i32, i32, i32) {
    %c0_i32 = arith.constant 0 : i32
    %c0_i32_0 = arith.constant 0 : i32
    %c0_i32_1 = arith.constant 0 : i32
    %c0_i32_2 = arith.constant 0 : i32
    return %c0_i32, %c0_i32_0, %c0_i32_1 : i32, i32, i32
  }
  func.func @transform_4(%arg0: i32) -> (i32, i32, i32) {
    %c0_i32 = arith.constant 0 : i32
    %c0_i32_0 = arith.constant 0 : i32
    %c0_i32_1 = arith.constant 0 : i32
    %c0_i32_2 = arith.constant 0 : i32
    return %c0_i32, %c0_i32_0, %c0_i32_1 : i32, i32, i32
  }
  func.func @transform_5(%arg0: i32) -> (i32, i32) {
    %c0_i32 = arith.constant 0 : i32
    %c0_i32_0 = arith.constant 0 : i32
    return %arg0, %c0_i32 : i32, i32
  }
}

</mosaic_0001>

<bundles_post_ra>
// kernel: tpu_custom_call.1
= control target key start
LH: loop header
LB: loop body
LE: loop exit
PB: predicated region body
PF: predicated region fallthrough
CT: control target
= control target key end

     0   :  { %10 = vsyncpa [#allocation3], 0  ;;  %s792_s0 = inlined_call_operand.vmem [shape: f32[128,4], index: 0, kind: input, shape index: {}]   ;;  %s793_s1 = inlined_call_operand.vmem [shape: f32[3,128], index: 1, kind: input, shape index: {}]   ;;  %s794_s2 = inlined_call_operand.hbm [shape: f32[3,64,128], index: 2, kind: input, shape index: {}]   ;;  %s795_s3 = inlined_call_operand.vmem [shape: f32[3,16,128], index: 3, kind: input, shape index: {}]   ;;  %s796_s4 = inlined_call_operand.vmem [shape: f32[3,4,128], index: 4, kind: input, shape index: {}]   ;;  %s797_s5 = inlined_call_operand.hbm [shape: f32[1,128], index: 5, kind: output, shape index: {}]  }
   0x1   :  { %11 = vsyncpa [#allocation4], 0  ;;  %s514_s18 = smov [#allocation2]  }
   0x2   :  { %s21_s19 = sshll.u32 %s514_s18, 4  ;;  %s22_s19 = int_to_ptr.vmem [resolvable:$true] %s21_s19 }
   0x3   :  { %s478_s20 = scalar_lea.vmem %s22_s19, 3072  ;;  %p483_p1 = scmp.lt.s32.totalorder %s22_s19, %s22_s19 }
   0x4   :  { %p479_p0 = scmp.ne.s32.totalorder %s22_s19, %s478_s20  ;;  %p484_p2 = scmp.lt.s32.totalorder %s478_s20, %s478_s20 }
   0x6   :  { %p485_p3 = por %p484_p2, %p483_p1 }
   0x8   :  { %p486_p4 = pnand %p485_p3, %p479_p0 }
   0xa   :  { %489 = shalt.err (!%p486_p4)
}
   0xb   :  { %s515_s21 = smov 128   ;;  %s516_s22 = smov 8  }
   0xc   :  { %27 = dma.hbm_to_vmem [thread:$0]  %s794_s2, 3072, %s22_s19, [#allocation3], %s515_s21, %s515_s21, %s516_s22  }
   0xd   :  { %510 = dma.done.wait [#allocation3], 3072  }
   0xe   :  { %511 = vsyncadd [#allocation3], 4294964224  ;;  %v35_v0 = vld [vmem:[%s792_s0] sm:$0xff]  ;;  %v36_v1 = vld [vmem:[%s792_s0 + $0x8] sm:$0xff]  ;;  %vm204_vm0 = vcmask 1043456   ;;  %vm351_vm1 = vcmask 1041409  }
   0xf   :  { %51 = vxpose.xlu0.b32.start [1/16] (narrow) %v35_v0, 8  ;;  %v37_v2 = vld [vmem:[%s792_s0 + $0x10] sm:$0xff]  ;;  %v38_v3 = vld [vmem:[%s792_s0 + $0x18] sm:$0xff]  ;;  %v39_v4 = vld [vmem:[%s792_s0 + $0x20] sm:$0xff]  ;;  %vm353_vm2 = vcmask 1042434   ;;  %vm355_vm3 = vcmask 1043459  }
  0x10   :  { %v40_v5 = vld [vmem:[%s792_s0 + $0x28] sm:$0xff]  ;;  %v41_v6 = vld [vmem:[%s792_s0 + $0x30] sm:$0xff]  ;;  %v42_v7 = vld [vmem:[%s792_s0 + $0x38] sm:$0xff]  ;;  %vm357_vm4 = vcmask 1044484   ;;  %vm359_vm5 = vcmask 1045509   ;;  %vm361_vm6 = vcmask 1046534  }
  0x11   :  { %v43_v8 = vld [vmem:[%s792_s0 + $0x40] sm:$0xff]  ;;  %v44_v9 = vld [vmem:[%s792_s0 + $0x48] sm:$0xff]  ;;  %v45_v10 = vld [vmem:[%s792_s0 + $0x50] sm:$0xff]  ;;  %vm363_vm7 = vcmask 1047559  }
  0x12   :  { %v46_v11 = vld [vmem:[%s792_s0 + $0x58] sm:$0xff]  ;;  %v47_v12 = vld [vmem:[%s792_s0 + $0x60] sm:$0xff]  ;;  %v48_v13 = vld [vmem:[%s792_s0 + $0x68] sm:$0xff] }
  0x13   :  { %52 = vxpose.xlu0.b32.cont [2/16] (narrow) %v36_v1, 8  ;;  %v49_v14 = vld [vmem:[%s792_s0 + $0x70] sm:$0xff]  ;;  %v50_v15 = vld [vmem:[%s792_s0 + $0x78] sm:$0xff]  ;;  %v602_v16 = vld [vmem:[%s793_s1] ss:$0 sm:$0xff] }
  0x14   :  { %v607_v17 = vld [vmem:[%s793_s1 + $0x1] ss:$0 sm:$0xff]  ;;  %v87_v19 = vld [vmem:[#allocation2 + $0x8] sm:$0xff]  ;;  %v88_v20 = vld [vmem:[#allocation2 + $0x10] sm:$0xff] }
  0x15   :  { %v86_v18 = vld [vmem:[#allocation2] sm:$0xff]  ;;  %v89_v21 = vld [vmem:[#allocation2 + $0x18] sm:$0xff]  ;;  %v108_v24 = vld [vmem:[#allocation2 + $0x48] sm:$0xff]  ;;  %v99_v32 = vmul.f32 %v602_v16, %v87_v19  ;;  %v100_v39 = vmul.f32 %v602_v16, %v88_v20 }
  0x16   :  { %v90_v22 = vld [vmem:[#allocation2 + $0x20] sm:$0xff]  ;;  %v91_v25 = vld [vmem:[#allocation2 + $0x28] sm:$0xff]  ;;  %v92_v26 = vld [vmem:[#allocation2 + $0x30] sm:$0xff]  ;;  %v98_v31 = vmul.f32 %v602_v16, %v86_v18  ;;  %v120_v37 = vmul.f32 %v607_v17, %v108_v24  ;;  %v101_v40 = vmul.f32 %v602_v16, %v89_v21 }
  0x17   :  { %53 = vxpose.xlu0.b32.cont [3/16] (narrow) %v37_v2, 8  ;;  %v107_v23 = vld [vmem:[#allocation2 + $0x40] sm:$0xff]  ;;  %v93_v27 = vld [vmem:[#allocation2 + $0x38] sm:$0xff]  ;;  %v109_v28 = vld [vmem:[#allocation2 + $0x50] sm:$0xff]  ;;  %v102_v41 = vmul.f32 %v602_v16, %v90_v22  ;;  %v103_v42 = vmul.f32 %v602_v16, %v91_v25  ;;  %v104_v45 = vmul.f32 %v602_v16, %v92_v26 }
  0x18   :  { %v110_v29 = vld [vmem:[#allocation2 + $0x58] sm:$0xff]  ;;  %v111_v30 = vld [vmem:[#allocation2 + $0x60] sm:$0xff]  ;;  %v112_v33 = vld [vmem:[#allocation2 + $0x68] sm:$0xff]  ;;  %v119_v36 = vmul.f32 %v607_v17, %v107_v23  ;;  %v105_v46 = vmul.f32 %v602_v16, %v93_v27  ;;  %v121_v47 = vmul.f32 %v607_v17, %v109_v28  ;;  %v128_v56 = vadd.f32 %v120_v37, %v99_v32 }
  0x19   :  { %v113_v34 = vld [vmem:[#allocation2 + $0x70] sm:$0xff]  ;;  %v114_v35 = vld [vmem:[#allocation2 + $0x78] sm:$0xff]  ;;  %v616_v38 = vld [vmem:[%s793_s1 + $0x2] ss:$0 sm:$0xff]  ;;  %v122_v48 = vmul.f32 %v607_v17, %v110_v29  ;;  %v123_v49 = vmul.f32 %v607_v17, %v111_v30  ;;  %v124_v50 = vmul.f32 %v607_v17, %v112_v33 }
  0x1a   :  { %v136_v43 = vld [vmem:[#allocation2 + $0x80] sm:$0xff]  ;;  %v137_v44 = vld [vmem:[#allocation2 + $0x88] sm:$0xff]  ;;  %v125_v51 = vmul.f32 %v607_v17, %v113_v34  ;;  %v126_v52 = vmul.f32 %v607_v17, %v114_v35  ;;  %v138_v53 = vld [vmem:[#allocation2 + $0x90] sm:$0xff]  ;;  %v127_v55 = vadd.f32 %v119_v36, %v98_v31  ;;  %v129_v60 = vadd.f32 %v121_v47, %v100_v39 }
  0x1b   :  { %54 = vxpose.xlu0.b32.cont [4/16] (narrow) %v38_v3, 8  ;;  %v139_v54 = vld [vmem:[#allocation2 + $0x98] sm:$0xff]  ;;  %v148_v57 = vmul.f32 %v616_v38, %v136_v43  ;;  %v149_v58 = vmul.f32 %v616_v38, %v137_v44  ;;  %v140_v59 = vld [vmem:[#allocation2 + $0xa0] sm:$0xff]  ;;  %v130_v61 = vadd.f32 %v122_v48, %v101_v40  ;;  %v141_v62 = vld [vmem:[#allocation2 + $0xa8] sm:$0xff]  ;;  %v150_v1 = vmul.f32 %v616_v38, %v138_v53 }
  0x1c   :  { %v142_v63 = vld [vmem:[#allocation2 + $0xb0] sm:$0xff]  ;;  %v143_v0 = vld [vmem:[#allocation2 + $0xb8] sm:$0xff]  ;;  %v151_v2 = vmul.f32 %v616_v38, %v139_v54  ;;  %v131_v3 = vadd.f32 %v123_v49, %v102_v41  ;;  %v318_v20 = vld [vmem:[%s795_s3 + $0x8] sm:$0xff] }
  0x1d   :  { %v460_v21 = vld [vmem:[%s795_s3 + $0x10] sm:$0xff]  ;;  %v461_v22 = vld [vmem:[%s795_s3 + $0x18] sm:$0xff]  ;;  %v320_v31 = vmul.f32 %v602_v16, %v318_v20  ;;  %v462_v39 = vld [vmem:[%s795_s3 + $0x20] sm:$0xff] }
  0x1e   :  { %v324_v32 = vmul.f32 %v460_v21, %v607_v17  ;;  %v325_v33 = vmul.f32 %v461_v22, %v607_v17  ;;  %v463_v40 = vld [vmem:[%s795_s3 + $0x28] sm:$0xff] }
  0x1f   :  { %55 = vxpose.xlu0.b32.cont [5/16] (narrow) %v39_v4, 8  ;;  %v132_v4 = vadd.f32 %v124_v50, %v103_v42 }
  0x20   :  { %v686_v50 = vadd.f32 %v325_v33, %v320_v31 }
  0x23   :  { %56 = vxpose.xlu0.b32.cont [6/16] (narrow) %v40_v5, 8  ;;  %v133_v5 = vadd.f32 %v125_v51, %v104_v45  ;;  %v331_v51 = vmul.f32 %v462_v39, %v616_v38 }
  0x27   :  { %57 = vxpose.xlu0.b32.cont [7/16] (narrow) %v41_v6, 8  ;;  %v134_v6 = vadd.f32 %v126_v52, %v105_v46  ;;  %v690_v52 = vmul.f32 %v463_v40, %v616_v38 }
  0x2b   :  { %58 = vxpose.xlu0.b32.cont [8/16] (narrow) %v42_v7, 8  ;;  %v156_v7 = vadd.f32 %v148_v57, %v127_v55 }
  0x2d   :  { %v172_v18 = vcombine.high %v156_v7, %v156_v7 }
  0x2f   :  { %59 = vxpose.xlu0.b32.cont [9/16] (narrow) %v43_v8, 8  ;;  %v157_v8 = vadd.f32 %v149_v58, %v128_v56 }
  0x31   :  { %v173_v19 = vcombine.high %v157_v8, %v157_v8 }
  0x33   :  { %60 = vxpose.xlu0.b32.cont [10/16] (narrow) %v44_v9, 8  ;;  %v152_v9 = vmul.f32 %v616_v38, %v140_v59 }
  0x35   :  { %v650_v23 = vadd.f32 %v152_v9, %v131_v3 }
  0x37   :  { %61 = vxpose.xlu0.b32.cont [11/16] (narrow) %v45_v10, 8  ;;  %v153_v10 = vmul.f32 %v616_v38, %v141_v62  ;;  %v176_v41 = vcombine.high %v650_v23, %v650_v23 }
  0x39   :  { %v652_v24 = vadd.f32 %v153_v10, %v132_v4 }
  0x3b   :  { %62 = vxpose.xlu0.b32.cont [12/16] (narrow) %v46_v11, 8  ;;  %v154_v11 = vmul.f32 %v616_v38, %v142_v63  ;;  %v177_v42 = vcombine.high %v652_v24, %v652_v24 }
  0x3d   :  { %v654_v25 = vadd.f32 %v154_v11, %v133_v5 }
  0x3f   :  { %63 = vxpose.xlu0.b32.cont [13/16] (narrow) %v47_v12, 8  ;;  %v155_v12 = vmul.f32 %v616_v38, %v143_v0  ;;  %v178_v43 = vcombine.high %v654_v25, %v654_v25 }
  0x41   :  { %v656_v26 = vadd.f32 %v155_v12, %v134_v6 }
  0x43   :  { %64 = vxpose.xlu0.b32.cont [14/16] (narrow) %v48_v13, 8  ;;  %v158_v13 = vadd.f32 %v150_v1, %v129_v60  ;;  %v179_v44 = vcombine.high %v656_v26, %v656_v26 }
  0x45   :  { %v174_v27 = vcombine.high %v158_v13, %v158_v13 }
  0x47   :  { %65 = vxpose.xlu0.b32.cont [15/16] (narrow) %v49_v14, 8  ;;  %v159_v14 = vadd.f32 %v151_v2, %v130_v61 }
  0x49   :  { %v175_v28 = vcombine.high %v159_v14, %v159_v14 }
  0x4b   :  { %66 = vxpose.xlu0.b32.end [16/16] (narrow) %v50_v15, 8  ;;  %v317_v15 = vld [vmem:[%s795_s3] sm:$0xff] }
  0x4c   :  { %v319_v30 = vmul.f32 %v602_v16, %v317_v15 }
  0x4e   :  { %v326_v49 = vadd.f32 %v324_v32, %v319_v30 }
  0x50   :  { %v700_v22 = vadd.f32 %v331_v51, %v326_v49 }
  0x8b   :  { %v658_v29 = vpop.trf.xlu0 }
  0x8c   :  { %v188_v34 = vmul.f32 %v156_v7, %v658_v29  ;;  %v189_v35 = vmul.f32 %v172_v18, %v658_v29  ;;  %v190_v36 = vmul.f32 %v157_v8, %v658_v29  ;;  %v191_v37 = vmul.f32 %v173_v19, %v658_v29 }
  0x8d   :  { %v192_v45 = vmul.f32 %v158_v13, %v658_v29  ;;  %v193_v46 = vmul.f32 %v174_v27, %v658_v29  ;;  %v194_v47 = vmul.f32 %v159_v14, %v658_v29  ;;  %v195_v48 = vmul.f32 %v175_v28, %v658_v29 }
  0x8e   :  { %v205_v53 = vsel %vm204_vm0, %v188_v34, 0.0  ;;  %v212_v54 = vsel %vm204_vm0, %v189_v35, 0.0  ;;  %v219_v55 = vsel %vm204_vm0, %v190_v36, 0.0  ;;  %v226_v56 = vsel %vm204_vm0, %v191_v37, 0.0 }
  0x8f   :  { %v206_v57 = vrot.slane %v205_v53, 4  ;;  %v213_v58 = vrot.slane %v212_v54, 4  ;;  %v220_v59 = vrot.slane %v219_v55, 4  ;;  %v227_v60 = vrot.slane %v226_v56, 4 }
  0x90   :  { %v233_v61 = vsel %vm204_vm0, %v192_v45, 0.0  ;;  %v240_v62 = vsel %vm204_vm0, %v193_v46, 0.0  ;;  %v247_v63 = vsel %vm204_vm0, %v194_v47, 0.0  ;;  %v254_v0 = vsel %vm204_vm0, %v195_v48, 0.0 }
  0x91   :  { %v207_v1 = vadd.f32 %v206_v57, %v205_v53  ;;  %v214_v2 = vadd.f32 %v213_v58, %v212_v54  ;;  %v221_v3 = vadd.f32 %v220_v59, %v219_v55  ;;  %v228_v4 = vadd.f32 %v227_v60, %v226_v56 }
  0x92   :  { %v234_v5 = vrot.slane %v233_v61, 4  ;;  %v241_v6 = vrot.slane %v240_v62, 4  ;;  %v248_v7 = vrot.slane %v247_v63, 4  ;;  %v255_v8 = vrot.slane %v254_v0, 4 }
  0x93   :  { %v208_v9 = vrot.slane %v207_v1, 2  ;;  %v215_v10 = vrot.slane %v214_v2, 2  ;;  %v222_v11 = vrot.slane %v221_v3, 2  ;;  %v229_v12 = vrot.slane %v228_v4, 2 }
  0x94   :  { %v235_v13 = vadd.f32 %v234_v5, %v233_v61  ;;  %v242_v14 = vadd.f32 %v241_v6, %v240_v62  ;;  %v249_v15 = vadd.f32 %v248_v7, %v247_v63  ;;  %v256_v18 = vadd.f32 %v255_v8, %v254_v0 }
  0x95   :  { %v209_v19 = vadd.f32 %v208_v9, %v207_v1  ;;  %v216_v20 = vadd.f32 %v215_v10, %v214_v2  ;;  %v223_v21 = vadd.f32 %v222_v11, %v221_v3  ;;  %v702_v27 = vadd.f32 %v229_v12, %v228_v4 }
  0x96   :  { %v236_v28 = vrot.slane %v235_v13, 2  ;;  %v243_v30 = vrot.slane %v242_v14, 2  ;;  %v250_v31 = vrot.slane %v249_v15, 2  ;;  %v196_v32 = vmul.f32 %v650_v23, %v658_v29 }
  0x97   :  { %v197_v33 = vmul.f32 %v176_v41, %v658_v29  ;;  %v198_v34 = vmul.f32 %v652_v24, %v658_v29  ;;  %v199_v35 = vmul.f32 %v177_v42, %v658_v29  ;;  %v210_v36 = vrot.slane %v209_v19, 1 }
  0x98   :  { %v217_v37 = vrot.slane %v216_v20, 1  ;;  %v224_v39 = vrot.slane %v223_v21, 1  ;;  %v257_v40 = vrot.slane %v256_v18, 2  ;;  %v200_v45 = vmul.f32 %v654_v25, %v658_v29 }
  0x99   :  { %v201_v46 = vmul.f32 %v178_v43, %v658_v29  ;;  %v202_v47 = vmul.f32 %v656_v26, %v658_v29  ;;  %v203_v23 = vmul.f32 %v179_v44, %v658_v29  ;;  %v231_v41 = vrot.slane %v702_v27, 1 }
  0x9a   :  { %v717_v48 = vadd.f32 %v236_v28, %v235_v13  ;;  %v719_v24 = vadd.f32 %v243_v30, %v242_v14  ;;  %v721_v42 = vadd.f32 %v250_v31, %v249_v15  ;;  %v261_v49 = vsel %vm204_vm0, %v196_v32, 0.0 }
  0x9b   :  { %v268_v51 = vsel %vm204_vm0, %v197_v33, 0.0  ;;  %v275_v25 = vsel %vm204_vm0, %v198_v34, 0.0  ;;  %v282_v43 = vsel %vm204_vm0, %v199_v35, 0.0  ;;  %v211_v53 = vadd.f32 %v210_v36, %v209_v19 }
  0x9c   :  { %v218_v26 = vadd.f32 %v217_v37, %v216_v20  ;;  %v727_v54 = vadd.f32 %v224_v39, %v223_v21  ;;  %v729_v44 = vadd.f32 %v257_v40, %v256_v18  ;;  %v262_v55 = vrot.slane %v261_v49, 4 }
  0x9d   :  { %v269_v56 = vrot.slane %v268_v51, 4  ;;  %v276_v57 = vrot.slane %v275_v25, 4  ;;  %v283_v58 = vrot.slane %v282_v43, 4  ;;  %v289_v59 = vsel %vm204_vm0, %v200_v45, 0.0 }
  0x9e   :  { %v296_v60 = vsel %vm204_vm0, %v201_v46, 0.0  ;;  %v303_v61 = vsel %vm204_vm0, %v202_v47, 0.0  ;;  %v310_v62 = vsel %vm204_vm0, %v203_v23, 0.0  ;;  %v263_v63 = vadd.f32 %v262_v55, %v261_v49 }
  0x9f   :  { %v270_v0 = vadd.f32 %v269_v56, %v268_v51  ;;  %v277_v1 = vadd.f32 %v276_v57, %v275_v25  ;;  %v284_v2 = vadd.f32 %v283_v58, %v282_v43  ;;  %v290_v3 = vrot.slane %v289_v59, 4 }
  0xa0   :  { %v297_v4 = vrot.slane %v296_v60, 4  ;;  %v304_v5 = vrot.slane %v303_v61, 4  ;;  %v311_v6 = vrot.slane %v310_v62, 4  ;;  %v264_v7 = vrot.slane %v263_v63, 2 }
  0xa1   :  { %v271_v8 = vrot.slane %v270_v0, 2  ;;  %v278_v9 = vrot.slane %v277_v1, 2  ;;  %v285_v10 = vrot.slane %v284_v2, 2  ;;  %v291_v11 = vadd.f32 %v290_v3, %v289_v59 }
  0xa2   :  { %v298_v12 = vadd.f32 %v297_v4, %v296_v60  ;;  %v305_v13 = vadd.f32 %v304_v5, %v303_v61  ;;  %v312_v14 = vadd.f32 %v311_v6, %v310_v62  ;;  %v265_v15 = vadd.f32 %v264_v7, %v263_v63 }
  0xa3   :  { %v272_v18 = vadd.f32 %v271_v8, %v270_v0  ;;  %v279_v19 = vadd.f32 %v278_v9, %v277_v1  ;;  %v286_v20 = vadd.f32 %v285_v10, %v284_v2  ;;  %v292_v21 = vrot.slane %v291_v11, 2 }
  0xa4   :  { %v299_v28 = vrot.slane %v298_v12, 2  ;;  %v306_v30 = vrot.slane %v305_v13, 2  ;;  %v313_v31 = vrot.slane %v312_v14, 2  ;;  %v266_v32 = vrot.slane %v265_v15, 1 }
  0xa5   :  { %v273_v33 = vrot.slane %v272_v18, 1  ;;  %v280_v34 = vrot.slane %v279_v19, 1  ;;  %v287_v35 = vrot.slane %v286_v20, 1  ;;  %v293_v36 = vadd.f32 %v292_v21, %v291_v11 }
  0xa6   :  { %v300_v37 = vadd.f32 %v299_v28, %v298_v12  ;;  %v307_v39 = vadd.f32 %v306_v30, %v305_v13  ;;  %v314_v40 = vadd.f32 %v313_v31, %v312_v14  ;;  %v238_v45 = vrot.slane %v717_v48, 1 }
  0xa7   :  { %v267_v46 = vadd.f32 %v266_v32, %v265_v15  ;;  %v274_v47 = vadd.f32 %v273_v33, %v272_v18  ;;  %v281_v23 = vadd.f32 %v280_v34, %v279_v19  ;;  %v245_v49 = vrot.slane %v719_v24, 1  ;;  %v414_v34 = vld [vmem:[%s796_s4] sm:$0xf] }
  0xa8   :  { %v294_v51 = vrot.slane %v293_v36, 1  ;;  %v301_v25 = vrot.slane %v300_v37, 1  ;;  %v334_v43 = vadd.f32 %v690_v52, %v686_v50  ;;  %v252_v55 = vrot.slane %v721_v42, 1 }
  0xa9   :  { %v308_v56 = vrot.slane %v307_v39, 1  ;;  %v352_v57 = vsel %vm351_vm1, %v218_v26, %v211_v53  ;;  %v365_v58 = vsel %vm351_vm1, %v274_v47, %v267_v46  ;;  %v232_v59 = vadd.f32 %v231_v41, %v702_v27 }
  0xaa   :  { %v259_v60 = vrot.slane %v729_v44, 1  ;;  %v288_v61 = vadd.f32 %v287_v35, %v286_v20  ;;  %v315_v62 = vrot.slane %v314_v40, 1  ;;  %v239_v63 = vadd.f32 %v238_v45, %v717_v48  ;;  %v464_v35 = vld [vmem:[%s796_s4 + $0x4] sm:$0xf] }
  0xab   :  { %v295_v0 = vadd.f32 %v294_v51, %v293_v36  ;;  %v354_v50 = vsel %vm353_vm2, %v727_v54, %v352_v57  ;;  %v366_v52 = vsel %vm353_vm2, %v281_v23, %v365_v58  ;;  %v246_v53 = vadd.f32 %v245_v49, %v719_v24 }
  0xac   :  { %v302_v26 = vadd.f32 %v301_v25, %v300_v37  ;;  %v356_v1 = vsel %vm355_vm3, %v232_v59, %v354_v50  ;;  %v367_v2 = vsel %vm355_vm3, %v288_v61, %v366_v52  ;;  %v253_v27 = vadd.f32 %v252_v55, %v721_v42  ;;  %v465_v25 = vld [vmem:[%s796_s4 + $0x8] sm:$0xf]  ;;  %s517_s4 = smov [#allocation5]  }
  0xad   :  { %v309_v41 = vadd.f32 %v308_v56, %v307_v39  ;;  %v358_v3 = vsel %vm357_vm4, %v239_v63, %v356_v1  ;;  %v368_v48 = vsel %vm357_vm4, %v295_v0, %v367_v2  ;;  %v260_v4 = vadd.f32 %v259_v60, %v729_v44  ;;  %s448_s26 = sshll.u32 %s517_s4, 4  ;;  %s449_s26 = int_to_ptr.vmem [resolvable:$true] %s448_s26 }
  0xae   :  { %v316_v5 = vadd.f32 %v315_v62, %v314_v40  ;;  %v360_v54 = vsel %vm359_vm5, %v246_v53, %v358_v3  ;;  %v369_v6 = vsel %vm359_vm5, %v302_v26, %v368_v48  ;;  %v415_v45 = vmul.f32 %v602_v16, %v414_v34  ;;  %s490_s27 = scalar_lea.vmem %s449_s26, 16  ;;  %s494_s28 = scalar_lea.vmem %s449_s26, 32 }
  0xaf   :  { %v362_v24 = vsel %vm361_vm6, %v253_v27, %v360_v54  ;;  %v370_v7 = vsel %vm361_vm6, %v309_v41, %v369_v6  ;;  %v418_v46 = vmul.f32 %v464_v35, %v607_v17  ;;  %v422_v59 = vmul.f32 %v465_v25, %v616_v38  ;;  %p491_p5 = scmp.ne.s32.totalorder %s449_s26, %s490_s27  ;;  %p495_p6 = scmp.lt.s32.totalorder %s449_s26, %s449_s26 }
  0xb0   :  { %v364_v8 = vsel %vm363_vm7, %v260_v4, %v362_v24  ;;  %v371_v42 = vsel %vm363_vm7, %v316_v5, %v370_v7  ;;  %p496_p7 = scmp.lt.s32.totalorder %s494_s28, %s490_s27 }
  0xb1   :  { %v374_v9 = vadd.f32 %v364_v8, %v700_v22  ;;  %v375_v10 = vadd.f32 %v371_v42, %v334_v43  ;;  %v419_v58 = vadd.f32 %v418_v46, %v415_v45 }
  0xb2   :  { %p497_p8 = por %p496_p7, %p495_p6 }
  0xb3   :  { %v378_v11 = vcombine.high %v374_v9, %v374_v9  ;;  %v379_v12 = vcombine.high %v375_v10, %v375_v10  ;;  %v382_v44 = vmul.f32 %v374_v9, %v658_v29  ;;  %v384_v13 = vmul.f32 %v375_v10, %v658_v29 }
  0xb4   :  { %v423_v63 = vadd.f32 %v422_v59, %v419_v58  ;;  %p498_p9 = pnand %p497_p8, %p491_p5 }
  0xb5   :  { %v383_v14 = vmul.f32 %v378_v11, %v658_v29  ;;  %v385_v15 = vmul.f32 %v379_v12, %v658_v29  ;;  %v386_v18 = vsel %vm204_vm0, %v382_v44, 0.0  ;;  %v400_v19 = vsel %vm204_vm0, %v384_v13, 0.0 }
  0xb6   :  { %v387_v20 = vrot.slane %v386_v18, 4  ;;  %v401_v21 = vrot.slane %v400_v19, 4 }
  0xb7   :  { %v393_v28 = vsel %vm204_vm0, %v383_v14, 0.0  ;;  %v407_v22 = vsel %vm204_vm0, %v385_v15, 0.0 }
  0xb8   :  { %v388_v30 = vadd.f32 %v387_v20, %v386_v18  ;;  %v394_v31 = vrot.slane %v393_v28, 4  ;;  %v402_v32 = vadd.f32 %v401_v21, %v400_v19  ;;  %v408_v33 = vrot.slane %v407_v22, 4 }
  0xba   :  { %v389_v36 = vrot.slane %v388_v30, 2  ;;  %v395_v37 = vadd.f32 %v394_v31, %v393_v28  ;;  %v403_v39 = vrot.slane %v402_v32, 2  ;;  %v409_v40 = vadd.f32 %v408_v33, %v407_v22 }
  0xbc   :  { %v390_v47 = vadd.f32 %v389_v36, %v388_v30  ;;  %v396_v23 = vrot.slane %v395_v37, 2  ;;  %v404_v49 = vadd.f32 %v403_v39, %v402_v32  ;;  %v410_v51 = vrot.slane %v409_v40, 2 }
  0xbe   :  { %v391_v43 = vrot.slane %v390_v47, 1  ;;  %v397_v55 = vadd.f32 %v396_v23, %v395_v37  ;;  %v411_v56 = vadd.f32 %v410_v51, %v409_v40  ;;  %v405_v57 = vrot.slane %v404_v49, 1 }
  0xc0   :  { %v398_v60 = vrot.slane %v397_v55, 1  ;;  %v412_v61 = vrot.slane %v411_v56, 1  ;;  %v392_v16 = vadd.f32 %v391_v43, %v390_v47  ;;  %v406_v17 = vadd.f32 %v405_v57, %v404_v49 }
  0xc2   :  { %v399_v62 = vadd.f32 %v398_v60, %v397_v55  ;;  %v413_v0 = vadd.f32 %v412_v61, %v411_v56 }
  0xc4   :  { %v428_v50 = vsel %vm351_vm1, %v399_v62, %v392_v16 }
  0xc5   :  { %v429_v52 = vsel %vm353_vm2, %v406_v17, %v428_v50 }
  0xc6   :  { %v430_v53 = vsel %vm355_vm3, %v413_v0, %v429_v52 }
  0xc7   :  { %v432_v26 = vadd.f32 %v430_v53, %v423_v63 }
  0xc9   :  { %v433_v1 = vmul.f32 %v432_v26, %v658_v29 }
  0xcb   :  { %v434_v2 = vsel %vm204_vm0, %v433_v1, 0.0 }
  0xcc   :  { %v435_v27 = vrot.slane %v434_v2, 4 }
  0xce   :  { %v436_v38 = vadd.f32 %v435_v27, %v434_v2 }
  0xd0   :  { %v437_v41 = vrot.slane %v436_v38, 2 }
  0xd2   :  { %v438_v3 = vadd.f32 %v437_v41, %v436_v38 }
  0xd4   :  { %v439_v48 = vrot.slane %v438_v3, 1 }
  0xd6   :  { %v440_v4 = vadd.f32 %v439_v48, %v438_v3 }
  0xd8   :  { %441 = vst [vmem:[#allocation5] sm:$0x1] %v440_v4 }
  0xd9   :  { %501 = shalt.err (!%p498_p9)
}
  0xda   :  { %451 = dma.vmem_to_hbm [thread:$0]  %s449_s26, 16, %s797_s5, [#allocation4]  }
  0xdb   :  { %512 = dma.done.wait [#allocation4], 16  }
  0xdc   :  { %513 = vsyncadd [#allocation4], 4294967280 }
  0xdd   :  { %455 = vsyncpa [#allocation3], 1 }
  0xde   :  { %456 = vsyncpa [#allocation4], 1 }

</bundles_post_ra>
